<compile_context>
chip_gen: v6e
topology: v6e:2x2x1
jax: 0.10.0
libtpu: 0.0.40
codegen_flags: <defaults>
</compile_context>

<pallas_src>
import functools

import jax
import jax.numpy as jnp
from jax.experimental import pallas as pl
from jax.experimental.pallas import tpu as pltpu


def _round_up(x, m):
    return ((x + m - 1) // m) * m


# ----------------------------------------------------------------------------
# Pallas kernel: fused  x @ W1 + b1 -> ReLU -> @ W2 + b2   (one batch tile)
# ----------------------------------------------------------------------------
def _mlp_head_kernel(x_ref, w1_ref, b1_ref, w2_ref, b2_ref, out_ref):
    x = x_ref[...]                                    # [TB, D]   bf16 (VMEM)
    w1 = w1_ref[...]                                  # [D, Hp]   bf16
    w2 = w2_ref[...]                                  # [Hp, Kp]  bf16

    # hidden layer on the MXU (bf16 operands, f32 accumulation)
    h = jnp.dot(x, w1, preferred_element_type=jnp.float32)          # [TB, Hp]
    h = h + b1_ref[...]                                              # bias bcast [1, Hp]
    h = jnp.maximum(h, 0.0)                                          # ReLU (VPU)

    # output layer (cast activations back to bf16 for the MXU)
    o = jnp.dot(h.astype(jnp.bfloat16), w2,
                preferred_element_type=jnp.float32)                  # [TB, Kp]
    out_ref[...] = (o + b2_ref[...]).astype(out_ref.dtype)


def _pallas_mlp_head(x_flat, w1, b1, w2, b2, *, tile_b):
    """x_flat: [Bp, D] bf16 (Bp % tile_b == 0); returns [Bp, Kp] f32."""
    Bp, D = x_flat.shape
    Hp = w1.shape[1]
    Kp = w2.shape[1]

    # TODO(synk): for very large D (real images, e.g. 3x224x224) the weight
    # slab should be tiled along the contraction dim with a VMEM f32
    # accumulator (pl.when init/finalize, reduction axis last + "arbitrary")
    # so double-buffered blocks stay inside v7x's 64 MiB VMEM / v5e's 16 MiB
    # scoped default. At D=1024 the full bf16 weight block stays resident.
    return pl.pallas_call(
        _mlp_head_kernel,
        out_shape=jax.ShapeDtypeStruct((Bp, Kp), jnp.float32),
        grid_spec=pltpu.PrefetchScalarGridSpec(
            num_scalar_prefetch=0,
            grid=(Bp // tile_b,),
            in_specs=[
                pl.BlockSpec((tile_b, D), lambda i: (i, 0)),
                pl.BlockSpec((D, Hp), lambda i: (0, 0)),
                pl.BlockSpec((1, Hp), lambda i: (0, 0)),
                pl.BlockSpec((Hp, Kp), lambda i: (0, 0)),
                pl.BlockSpec((1, Kp), lambda i: (0, 0)),
            ],
            out_specs=pl.BlockSpec((tile_b, Kp), lambda i: (i, 0)),
        ),
        compiler_params=pltpu.CompilerParams(
            dimension_semantics=("parallel",)),
    )(x_flat, w1, b1, w2, b2)


# ----------------------------------------------------------------------------
# jitted forward core (weights are real arguments, not baked-in constants)
# ----------------------------------------------------------------------------
_SUBLANE = 8   # batch tile must be a multiple of this
_LANE = 128    # hidden / class dims padded to this (lane-dense)


@functools.partial(jax.jit, static_argnames=("num_classes",))
def _forward_core(x, w1, b1, w2, b2, *, num_classes):
    # x: [B, C, H, W] float32 (NCHW, matching PyTorch conv convention)
    B = x.shape[0]
    x_flat = x.reshape(B, -1).astype(jnp.bfloat16)    # glue reshape/cast in plain JAX

    # Batch tile: at least 8 sublanes, at most 128 rows per grid step.
    tile_b = min(128, _round_up(B, _SUBLANE))
    Bp = _round_up(B, tile_b)
    x_pad = jnp.pad(x_flat, ((0, Bp - B), (0, 0)))

    logits_p = _pallas_mlp_head(x_pad, w1, b1, w2, b2, tile_b=tile_b)
    # Strip batch / class padding outside the kernel.
    return {"pred": logits_p[:B, :num_classes]}


# ----------------------------------------------------------------------------
# Network wrapper (stand-in for a concrete AbstractPyTorchNetwork subclass)
# ----------------------------------------------------------------------------
class PallasNetwork:
    """Concrete network honoring AbstractPyTorchNetwork's forward contract."""

    def __init__(self, in_channels=4, spatial=16, hidden=32, num_classes=10):
        self.in_features = in_channels * spatial * spatial
        self.hidden = hidden
        self.num_classes = num_classes

        # Padded dims used inside the kernel (lane-dense, MXU friendly).
        self.hidden_p = _round_up(hidden, _LANE)
        self.classes_p = _round_up(num_classes, _LANE)

        # Deterministic parameter init (synthetic, no checkpoint load).
        k = jax.random.PRNGKey(0)
        k1, k2 = jax.random.split(k)
        scale1 = 1.0 / jnp.sqrt(jnp.float32(self.in_features))
        scale2 = 1.0 / jnp.sqrt(jnp.float32(hidden))
        w1 = jax.random.normal(k1, (self.in_features, hidden),
                               jnp.float32) * scale1
        w2 = jax.random.normal(k2, (hidden, num_classes),
                               jnp.float32) * scale2

        # Zero-pad H -> Hp and K -> Kp. Padded hidden units have zero incoming
        # weight and zero bias (so ReLU output is 0) and zero outgoing weight,
        # and padded classes have zero weight/bias, so the padding is inert.
        w1_p = jnp.zeros((self.in_features, self.hidden_p), jnp.float32)
        w1_p = w1_p.at[:, :hidden].set(w1)
        w2_p = jnp.zeros((self.hidden_p, self.classes_p), jnp.float32)
        w2_p = w2_p.at[:hidden, :num_classes].set(w2)

        # bf16 weights (MXU-native), f32 biases.
        self.w1 = w1_p.astype(jnp.bfloat16)
        self.w2 = w2_p.astype(jnp.bfloat16)
        self.b1 = jnp.zeros((1, self.hidden_p), jnp.float32)
        self.b2 = jnp.zeros((1, self.classes_p), jnp.float32)

    @staticmethod
    def prepare_batch(batch: dict):
        # Mirrors AbstractPyTorchNetwork.prepare_batch: cast everything to f32.
        # TODO(synk): device placement (input_device/output_device) is handled
        # by JAX's default TPU placement, not replicated explicitly.
        return {k: jnp.asarray(v, jnp.float32) for k, v in batch.items()}

    def forward(self, x):
        return _forward_core(x, self.w1, self.b1, self.w2, self.b2,
                             num_classes=self.num_classes)

    def __call__(self, x):
        return self.forward(x)


# ----------------------------------------------------------------------------
# main
# ----------------------------------------------------------------------------
if __name__ == "__main__":
    B, C, Hs, Ws = 2, 4, 16, 16
    key = jax.random.PRNGKey(0)
    data = jax.random.normal(key, (B, C, Hs, Ws), jnp.float32)

    model = PallasNetwork(in_channels=C, spatial=Hs, hidden=32, num_classes=10)

    batch = model.prepare_batch({"data": data})
    preds = model(batch["data"])
    pred = jax.block_until_ready(preds["pred"])

    # Reference check against plain JAX, mirroring the kernel's bf16 operand /
    # f32 accumulation numerics (operands rounded to bf16, math in f32).
    x_flat = batch["data"].reshape(B, -1).astype(jnp.bfloat16).astype(jnp.float32)
    w1_f = model.w1.astype(jnp.float32)
    w2_f = model.w2.astype(jnp.float32)
    h_ref = jnp.maximum(x_flat @ w1_f + model.b1, 0.0)
    ref_full = h_ref.astype(jnp.bfloat16).astype(jnp.float32) @ w2_f + model.b2
    ref = ref_full[:, :model.num_classes]

    assert pred.shape == (B, 10)
    assert jnp.allclose(pred, ref, atol=2e-2, rtol=2e-2), "mismatch vs reference"

    print("KERNEL_OK")
</pallas_src>

<mosaic_0001>
module attributes {stable_mosaic.version = 11 : i64} {
  func.func @_mlp_head_kernel(%arg0: i32, %arg1: memref<8x1024xbf16, #tpu.memory_space<vmem>>, %arg2: memref<1024x128xbf16, #tpu.memory_space<vmem>>, %arg3: memref<1x128xf32, #tpu.memory_space<vmem>>, %arg4: memref<128x128xbf16, #tpu.memory_space<vmem>>, %arg5: memref<1x128xf32, #tpu.memory_space<vmem>>, %arg6: memref<8x128xf32, #tpu.memory_space<vmem>>) attributes {dimension_semantics = [#tpu.dimension_semantics<parallel>], iteration_bounds = array<i64: 1>, scalar_prefetch = 0 : i64, scratch_operands = 0 : i64, tpu.core_type = #tpu.core_type<tc>, window_params = [{transform_indices = @transform_0, window_bounds = array<i64: 8, 1024>}, {pipeline_mode = #tpu.pipeline_mode<synchronous>, transform_indices = @transform_1, window_bounds = array<i64: 1024, 128>}, {pipeline_mode = #tpu.pipeline_mode<synchronous>, transform_indices = @transform_2, window_bounds = array<i64: 1, 128>}, {pipeline_mode = #tpu.pipeline_mode<synchronous>, transform_indices = @transform_3, window_bounds = array<i64: 128, 128>}, {pipeline_mode = #tpu.pipeline_mode<synchronous>, transform_indices = @transform_4, window_bounds = array<i64: 1, 128>}, {transform_indices = @transform_5, window_bounds = array<i64: 8, 128>}]} {
    %c0 = arith.constant 0 : index
    %c0_0 = arith.constant 0 : index
    %0 = vector.load %arg1[%c0, %c0_0] : memref<8x1024xbf16, #tpu.memory_space<vmem>>, vector<8x1024xbf16>
    %c0_1 = arith.constant 0 : index
    %c0_2 = arith.constant 0 : index
    %1 = vector.load %arg2[%c0_1, %c0_2] : memref<1024x128xbf16, #tpu.memory_space<vmem>>, vector<1024x128xbf16>
    %c0_3 = arith.constant 0 : index
    %c0_4 = arith.constant 0 : index
    %2 = vector.load %arg4[%c0_3, %c0_4] : memref<128x128xbf16, #tpu.memory_space<vmem>>, vector<128x128xbf16>
    %cst = arith.constant dense<0.000000e+00> : vector<8x128xf32>
    %3 = tpu.matmul %0, %1, %cst {dimension_numbers = #tpu.dot_dimension_numbers<[1], [0], [0], [1], [0, 0, 1, 1], [], []>} : vector<8x1024xbf16>, vector<1024x128xbf16>, vector<8x128xf32> -> vector<8x128xf32>
    %c0_5 = arith.constant 0 : index
    %c0_6 = arith.constant 0 : index
    %4 = vector.load %arg3[%c0_5, %c0_6] : memref<1x128xf32, #tpu.memory_space<vmem>>, vector<1x128xf32>
    %5 = vector.broadcast %4 : vector<1x128xf32> to vector<8x128xf32>
    %6 = arith.addf %3, %5 : vector<8x128xf32>
    %cst_7 = arith.constant 0.000000e+00 : f32
    %7 = vector.broadcast %cst_7 : f32 to vector<8x128xf32>
    %8 = arith.maximumf %6, %7 : vector<8x128xf32>
    %9 = arith.truncf %8 : vector<8x128xf32> to vector<8x128xbf16>
    %cst_8 = arith.constant dense<0.000000e+00> : vector<8x128xf32>
    %10 = tpu.matmul %9, %2, %cst_8 {dimension_numbers = #tpu.dot_dimension_numbers<[1], [0], [0], [1], [0, 0, 1, 1], [], []>} : vector<8x128xbf16>, vector<128x128xbf16>, vector<8x128xf32> -> vector<8x128xf32>
    %c0_9 = arith.constant 0 : index
    %c0_10 = arith.constant 0 : index
    %11 = vector.load %arg5[%c0_9, %c0_10] : memref<1x128xf32, #tpu.memory_space<vmem>>, vector<1x128xf32>
    %12 = vector.broadcast %11 : vector<1x128xf32> to vector<8x128xf32>
    %13 = arith.addf %10, %12 : vector<8x128xf32>
    %c0_11 = arith.constant 0 : index
    %c0_12 = arith.constant 0 : index
    %14 = vector.load %arg6[%c0_11, %c0_12] : memref<8x128xf32, #tpu.memory_space<vmem>>, vector<8x128xf32>
    tpu.vector_store %arg6[%c0_11, %c0_12], %13 {strides = array<i32>} : memref<8x128xf32, #tpu.memory_space<vmem>>, vector<8x128xf32>,
    return
  }
  func.func @transform_0(%arg0: i32) -> (i32, i32) {
    %c0_i32 = arith.constant 0 : i32
    %c0_i32_0 = arith.constant 0 : i32
    return %arg0, %c0_i32 : i32, i32
  }
  func.func @transform_1(%arg0: i32) -> (i32, i32) {
    %c0_i32 = arith.constant 0 : i32
    %c0_i32_0 = arith.constant 0 : i32
    %c0_i32_1 = arith.constant 0 : i32
    return %c0_i32, %c0_i32_0 : i32, i32
  }
  func.func @transform_2(%arg0: i32) -> (i32, i32) {
    %c0_i32 = arith.constant 0 : i32
    %c0_i32_0 = arith.constant 0 : i32
    %c0_i32_1 = arith.constant 0 : i32
    return %c0_i32, %c0_i32_0 : i32, i32
  }
  func.func @transform_3(%arg0: i32) -> (i32, i32) {
    %c0_i32 = arith.constant 0 : i32
    %c0_i32_0 = arith.constant 0 : i32
    %c0_i32_1 = arith.constant 0 : i32
    return %c0_i32, %c0_i32_0 : i32, i32
  }
  func.func @transform_4(%arg0: i32) -> (i32, i32) {
    %c0_i32 = arith.constant 0 : i32
    %c0_i32_0 = arith.constant 0 : i32
    %c0_i32_1 = arith.constant 0 : i32
    return %c0_i32, %c0_i32_0 : i32, i32
  }
  func.func @transform_5(%arg0: i32) -> (i32, i32) {
    %c0_i32 = arith.constant 0 : i32
    %c0_i32_0 = arith.constant 0 : i32
    return %arg0, %c0_i32 : i32, i32
  }
}

</mosaic_0001>

<bundles_post_ra>
// kernel: _forward_core.1
= control target key start
LH: loop header
LB: loop body
LE: loop exit
PB: predicated region body
PF: predicated region fallthrough
CT: control target
= control target key end

     0   :  { %10 = vsyncpa [#allocation3], 0  ;;  %s1171_s18 = smov [#allocation2]   ;;  %s1254_s0 = inlined_call_operand.vmem [shape: bf16[8,1024], index: 0, kind: input, shape index: {}]   ;;  %s1255_s1 = inlined_call_operand.hbm [shape: bf16[1024,128], index: 1, kind: input, shape index: {}]   ;;  %s1256_s2 = inlined_call_operand.vmem [shape: f32[1,128], index: 2, kind: input, shape index: {}]   ;;  %s1257_s3 = inlined_call_operand.vmem [shape: bf16[128,128], index: 3, kind: input, shape index: {}]   ;;  %s1258_s4 = inlined_call_operand.vmem [shape: f32[1,128], index: 4, kind: input, shape index: {}]   ;;  %s1259_s5 = inlined_call_operand.vmem [shape: f32[8,128], index: 5, kind: output, shape index: {}]  }
   0x1   :  { %s18_s19 = sshll.u32 %s1171_s18, 4  ;;  %s19_s19 = int_to_ptr.vmem [resolvable:$true] %s18_s19 }
   0x2   :  { %s1157_s20 = scalar_lea.vmem %s19_s19, 8192  ;;  %p1162_p1 = scmp.lt.s32.totalorder %s19_s19, %s19_s19 }
   0x3   :  { %p1158_p0 = scmp.ne.s32.totalorder %s19_s19, %s1157_s20  ;;  %p1163_p2 = scmp.lt.s32.totalorder %s1157_s20, %s1157_s20 }
   0x5   :  { %p1164_p3 = por %p1163_p2, %p1162_p1 }
   0x7   :  { %p1165_p4 = pnand %p1164_p3, %p1158_p0 }
   0x9   :  { %1168 = shalt.err (!%p1165_p4)
}
   0xa   :  { %s1172_s21 = smov 64   ;;  %s1173_s22 = smov 4  }
   0xb   :  { %24 = dma.hbm_to_vmem [thread:$0]  %s1255_s1, 8192, %s19_s19, [#allocation3], %s1172_s21, %s1172_s21, %s1173_s22  }
   0xc   :  { %1169 = dma.done.wait [#allocation3], 8192  }
   0xd   :  { %1170 = vsyncadd [#allocation3], 4294959104  ;;  %v1069_v0 = vld [vmem:[#allocation2 + $0x78] sm:$0xff]   ;;  %v1073_v4 = vld [vmem:[#allocation2 + $0x70] sm:$0xff]   ;;  %vm1175_vm0 = vmmov 0  }
   0xe   :  { %v1070_v1 = vld [vmem:[#allocation2 + $0xf8] sm:$0xff]   ;;  %947 = vmatprep.subr.bf16.mxu0 %v1069_v0  ;;  %v1074_v5 = vld [vmem:[#allocation2 + $0xf0] sm:$0xff]   ;;  %v1077_v8 = vld [vmem:[#allocation2 + $0x68] sm:$0xff]  }
   0xf   :  { %v1071_v2 = vld [vmem:[#allocation2 + $0x38] sm:$0xff]   ;;  %969 = vmatprep.subr.bf16.mxu1 %v1070_v1  ;;  %v1075_v6 = vld [vmem:[#allocation2 + $0x30] sm:$0xff]   ;;  %v1078_v9 = vld [vmem:[#allocation2 + $0xe8] sm:$0xff]  }
  0x10   :  { %v1072_v3 = vld [vmem:[#allocation2 + $0xb8] sm:$0xff]   ;;  %948 = vmatpush3.bf16.msra.mxu0 %v1071_v2  ;;  %v1076_v7 = vld [vmem:[#allocation2 + $0xb0] sm:$0xff]   ;;  %v1079_v10 = vld [vmem:[#allocation2 + $0x28] sm:$0xff]  }
  0x11   :  { %970 = vmatpush3.bf16.msra.mxu1 %v1072_v3  ;;  %949 = vmatprep.subr.bf16.mxu0 %v1073_v4  ;;  %v1080_v11 = vld [vmem:[#allocation2 + $0xa8] sm:$0xff]   ;;  %v1081_v12 = vld [vmem:[#allocation2 + $0x60] sm:$0xff]   ;;  %v1085_v16 = vld [vmem:[#allocation2 + $0x58] sm:$0xff]  }
  0x12   :  { %971 = vmatprep.subr.bf16.mxu1 %v1074_v5  ;;  %v1082_v13 = vld [vmem:[#allocation2 + $0xe0] sm:$0xff]   ;;  %v1086_v17 = vld [vmem:[#allocation2 + $0xd8] sm:$0xff]   ;;  %v1089_v20 = vld [vmem:[#allocation2 + $0x50] sm:$0xff]  }
  0x13   :  { %v1083_v14 = vld [vmem:[#allocation2 + $0x20] sm:$0xff]   ;;  %v1087_v18 = vld [vmem:[#allocation2 + $0x18] sm:$0xff]   ;;  %v1090_v21 = vld [vmem:[#allocation2 + $0xd0] sm:$0xff]  }
  0x14   :  { %950 = vmatpush3.bf16.msra.mxu0 %v1075_v6  ;;  %v1084_v15 = vld [vmem:[#allocation2 + $0xa0] sm:$0xff]   ;;  %v1088_v19 = vld [vmem:[#allocation2 + $0x98] sm:$0xff]   ;;  %v1091_v22 = vld [vmem:[#allocation2 + $0x10] sm:$0xff]  }
  0x15   :  { %972 = vmatpush3.bf16.msra.mxu1 %v1076_v7  ;;  %951 = vmatprep.subr.bf16.mxu0 %v1077_v8  ;;  %v1092_v23 = vld [vmem:[#allocation2 + $0x90] sm:$0xff]   ;;  %v1093_v24 = vld [vmem:[#allocation2 + $0x48] sm:$0xff]   ;;  %v1097_v28 = vld [vmem:[#allocation2 + $0x40] sm:$0xff]  }
  0x16   :  { %973 = vmatprep.subr.bf16.mxu1 %v1078_v9  ;;  %v1094_v25 = vld [vmem:[#allocation2 + $0xc8] sm:$0xff]   ;;  %v1098_v29 = vld [vmem:[#allocation2 + $0xc0] sm:$0xff]   ;;  %v1105_v38 = vld [vmem:[#allocation2 + $0x178] sm:$0xff]  }
  0x17   :  { %v1095_v26 = vld [vmem:[#allocation2 + $0x8] sm:$0xff]   ;;  %v1099_v30 = vld [vmem:[#allocation2] sm:$0xff]   ;;  %v1106_v39 = vld [vmem:[#allocation2 + $0x1f8] sm:$0xff]  }
  0x18   :  { %952 = vmatpush3.bf16.msra.mxu0 %v1079_v10  ;;  %v1096_v27 = vld [vmem:[#allocation2 + $0x88] sm:$0xff]   ;;  %v1100_v31 = vld [vmem:[#allocation2 + $0x80] sm:$0xff]   ;;  %v1107_v40 = vld [vmem:[#allocation2 + $0x138] sm:$0xff]  }
  0x19   :  { %974 = vmatpush3.bf16.msra.mxu1 %v1080_v11  ;;  %953 = vmatprep.subr.bf16.mxu0 %v1081_v12  ;;  %v35_v32 = vld [vmem:[%s1254_s0] sm:$0xff]  ;;  %v36_v33 = vld [vmem:[%s1254_s0 + $0x8] sm:$0xff]  ;;  %v1108_v41 = vld [vmem:[#allocation2 + $0x1b8] sm:$0xff]  }
  0x1a   :  { %975 = vmatprep.subr.bf16.mxu1 %v1082_v13  ;;  %v866_v34 = vcombine.low %v35_v32, %v35_v32  ;;  %v867_v35 = vcombine.high %v35_v32, %v35_v32  ;;  %v868_v36 = vcombine.low %v36_v33, %v36_v33  ;;  %v869_v37 = vcombine.high %v36_v33, %v36_v33  ;;  %v1109_v42 = vld [vmem:[#allocation2 + $0x170] sm:$0xff]   ;;  %v1113_v46 = vld [vmem:[#allocation2 + $0x168] sm:$0xff]   ;;  %v1117_v50 = vld [vmem:[#allocation2 + $0x160] sm:$0xff]  }
  0x1b   :  { %v1110_v43 = vld [vmem:[#allocation2 + $0x1f0] sm:$0xff]   ;;  %v1114_v47 = vld [vmem:[#allocation2 + $0x1e8] sm:$0xff]   ;;  %v1118_v51 = vld [vmem:[#allocation2 + $0x1e0] sm:$0xff]   ;;  %v1174_v13 = vmov 0.0  }
  0x1c   :  { %954 = vmatpush3.bf16.msra.mxu0 %v1083_v14  ;;  %634 = vmatprep.mubr.bf16.mxu0 %v867_v35  ;;  %v1111_v44 = vld [vmem:[#allocation2 + $0x130] sm:$0xff]   ;;  %v1115_v48 = vld [vmem:[#allocation2 + $0x128] sm:$0xff]   ;;  %v1119_v52 = vld [vmem:[#allocation2 + $0x120] sm:$0xff]  }
  0x1d   :  { %976 = vmatpush3.bf16.msra.mxu1 %v1084_v15  ;;  %955 = vmatprep.subr.bf16.mxu0 %v1085_v16  ;;  %v1112_v45 = vld [vmem:[#allocation2 + $0x1b0] sm:$0xff]   ;;  %v1116_v49 = vld [vmem:[#allocation2 + $0x1a8] sm:$0xff]   ;;  %v1120_v53 = vld [vmem:[#allocation2 + $0x1a0] sm:$0xff]  }
  0x1e   :  { %977 = vmatprep.subr.bf16.mxu1 %v1086_v17  ;;  %674 = vmatprep.mubr.bf16.mxu1 %v869_v37  ;;  %v1121_v54 = vld [vmem:[#allocation2 + $0x158] sm:$0xff]   ;;  %v1125_v58 = vld [vmem:[#allocation2 + $0x150] sm:$0xff]   ;;  %v1129_v62 = vld [vmem:[#allocation2 + $0x148] sm:$0xff]  }
  0x1f   :  { %v1122_v55 = vld [vmem:[#allocation2 + $0x1d8] sm:$0xff]   ;;  %v1126_v59 = vld [vmem:[#allocation2 + $0x1d0] sm:$0xff]   ;;  %v1130_v63 = vld [vmem:[#allocation2 + $0x1c8] sm:$0xff]  }
  0x20   :  { %956 = vmatpush3.bf16.msra.mxu0 %v1087_v18  ;;  %v1123_v56 = vld [vmem:[#allocation2 + $0x118] sm:$0xff]   ;;  %v1127_v60 = vld [vmem:[#allocation2 + $0x110] sm:$0xff]   ;;  %v1131_v0 = vld [vmem:[#allocation2 + $0x108] sm:$0xff]  }
  0x21   :  { %978 = vmatpush3.bf16.msra.mxu1 %v1088_v19  ;;  %957 = vmatprep.subr.bf16.mxu0 %v1089_v20  ;;  %v1124_v57 = vld [vmem:[#allocation2 + $0x198] sm:$0xff]   ;;  %v1128_v61 = vld [vmem:[#allocation2 + $0x190] sm:$0xff]   ;;  %v1132_v1 = vld [vmem:[#allocation2 + $0x188] sm:$0xff]  }
  0x22   :  { %979 = vmatprep.subr.bf16.mxu1 %v1090_v21  ;;  %v1133_v2 = vld [vmem:[#allocation2 + $0x140] sm:$0xff]   ;;  %v37_v6 = vld [vmem:[%s1254_s0 + $0x10] sm:$0xff]  ;;  %v38_v9 = vld [vmem:[%s1254_s0 + $0x18] sm:$0xff] }
  0x23   :  { %v1134_v3 = vld [vmem:[#allocation2 + $0x1c0] sm:$0xff]   ;;  %v870_v7 = vcombine.low %v37_v6, %v37_v6  ;;  %v871_v8 = vcombine.high %v37_v6, %v37_v6  ;;  %v872_v10 = vcombine.low %v38_v9, %v38_v9  ;;  %v873_v11 = vcombine.high %v38_v9, %v38_v9  ;;  %v1141_v12 = vld [vmem:[%s1257_s3 + $0x38] sm:$0xff]   ;;  %v1142_v14 = vld [vmem:[%s1257_s3 + $0x30] sm:$0xff]  }
  0x24   :  { %958 = vmatpush3.bf16.msra.mxu0 %v1091_v22  ;;  %v1135_v4 = vld [vmem:[#allocation2 + $0x100] sm:$0xff]   ;;  %v1143_v15 = vld [vmem:[%s1257_s3 + $0x28] sm:$0xff]   ;;  %v1145_v17 = vld [vmem:[%s1257_s3 + $0x18] sm:$0xff]  }
  0x25   :  { %980 = vmatpush3.bf16.msra.mxu1 %v1092_v23  ;;  %959 = vmatprep.subr.bf16.mxu0 %v1093_v24  ;;  %v1136_v5 = vld [vmem:[#allocation2 + $0x180] sm:$0xff]   ;;  %v1146_v18 = vld [vmem:[%s1257_s3 + $0x10] sm:$0xff]   ;;  %v1147_v19 = vld [vmem:[%s1257_s3 + $0x8] sm:$0xff]  }
  0x26   :  { %981 = vmatprep.subr.bf16.mxu1 %v1094_v25  ;;  %v1144_v16 = vld [vmem:[%s1257_s3 + $0x20] sm:$0xff]  }
  0x27   :  { %v1148_v20 = vld [vmem:[%s1257_s3] sm:$0xff]  }
  0x28   :  { %960 = vmatpush3.bf16.msra.mxu0 %v1095_v26 }
  0x29   :  { %982 = vmatpush3.bf16.msra.mxu1 %v1096_v27  ;;  %961 = vmatprep.subr.bf16.mxu0 %v1097_v28 }
  0x2a   :  { %983 = vmatprep.subr.bf16.mxu1 %v1098_v29 }
  0x2c   :  { %962 = vmatpush3.bf16.msra.mxu0 %v1099_v30  ;;  %v865_v30 = vld [vmem:[%s1256_s2] ss:$0 sm:$0xff] }
  0x2d   :  { %984 = vmatpush3.bf16.msra.mxu1 %v1100_v31  ;;  %991 = vmatprep.subr.bf16.mxu0 %v1105_v38 }
  0x2e   :  { %1013 = vmatprep.subr.bf16.mxu1 %v1106_v39 }
  0x2f   :  { %635 = vmatmul.mubr.bf16.vlgmr.msra.gmra.mxu0 %v866_v34 }
  0x30   :  { %675 = vmatmul.mubr.bf16.vlgmr.msra.gmra.mxu1 %v868_v36  ;;  %992 = vmatpush3.bf16.msra.mxu0 %v1107_v40 }
  0x31   :  { %1014 = vmatpush3.bf16.msra.mxu1 %v1108_v41  ;;  %993 = vmatprep.subr.bf16.mxu0 %v1109_v42 }
  0x32   :  { %1015 = vmatprep.subr.bf16.mxu1 %v1110_v43  ;;  %714 = vmatprep.mubr.bf16.mxu0 %v871_v8 }
  0x33   :  { %754 = vmatprep.mubr.bf16.mxu1 %v873_v11 }
  0x34   :  { %994 = vmatpush3.bf16.msra.mxu0 %v1111_v44 }
  0x35   :  { %1016 = vmatpush3.bf16.msra.mxu1 %v1112_v45  ;;  %995 = vmatprep.subr.bf16.mxu0 %v1113_v46 }
  0x36   :  { %1017 = vmatprep.subr.bf16.mxu1 %v1114_v47 }
  0x38   :  { %996 = vmatpush3.bf16.msra.mxu0 %v1115_v48  ;;  %v938_v48 = vld [vmem:[%s1258_s4] ss:$0 sm:$0xff] }
  0x39   :  { %1018 = vmatpush3.bf16.msra.mxu1 %v1116_v49  ;;  %997 = vmatprep.subr.bf16.mxu0 %v1117_v50 }
  0x3a   :  { %1019 = vmatprep.subr.bf16.mxu1 %v1118_v51 }
  0x3c   :  { %998 = vmatpush3.bf16.msra.mxu0 %v1119_v52 }
  0x3d   :  { %1020 = vmatpush3.bf16.msra.mxu1 %v1120_v53  ;;  %999 = vmatprep.subr.bf16.mxu0 %v1121_v54 }
  0x3e   :  { %1021 = vmatprep.subr.bf16.mxu1 %v1122_v55 }
  0x40   :  { %1000 = vmatpush3.bf16.msra.mxu0 %v1123_v56 }
  0x41   :  { %1022 = vmatpush3.bf16.msra.mxu1 %v1124_v57  ;;  %1001 = vmatprep.subr.bf16.mxu0 %v1125_v58 }
  0x42   :  { %1023 = vmatprep.subr.bf16.mxu1 %v1126_v59 }
  0x44   :  { %1002 = vmatpush3.bf16.msra.mxu0 %v1127_v60 }
  0x45   :  { %1024 = vmatpush3.bf16.msra.mxu1 %v1128_v61  ;;  %1003 = vmatprep.subr.bf16.mxu0 %v1129_v62 }
  0x46   :  { %1025 = vmatprep.subr.bf16.mxu1 %v1130_v63 }
  0x48   :  { %1004 = vmatpush3.bf16.msra.mxu0 %v1131_v0 }
  0x49   :  { %1026 = vmatpush3.bf16.msra.mxu1 %v1132_v1  ;;  %1005 = vmatprep.subr.bf16.mxu0 %v1133_v2 }
  0x4a   :  { %1027 = vmatprep.subr.bf16.mxu1 %v1134_v3 }
  0x4c   :  { %1006 = vmatpush3.bf16.msra.mxu0 %v1135_v4 }
  0x4d   :  { %1028 = vmatpush3.bf16.msra.mxu1 %v1136_v5  ;;  %1044 = vmatprep.subr.bf16.mxu0 %v1174_v13 }
  0x4f   :  { %715 = vmatmul.mubr.bf16.vlgmr.msra.gmra.mxu0 %v870_v7 }
  0x50   :  { %755 = vmatmul.mubr.bf16.vlgmr.msra.gmra.mxu1 %v872_v10  ;;  %1045 = vmatpush3.bf16.msra.mxu0 %v1141_v12 }
  0x51   :  { %1046 = vmatprep.subr.bf16.mxu0 %v1174_v13  ;;  %1060 = vmatprep.mubr.msk.bf16.mxu0 %vm1175_vm0, %v1174_v13 }
  0x54   :  { %1047 = vmatpush3.bf16.msra.mxu0 %v1142_v14 }
  0x55   :  { %1048 = vmatprep.subr.bf16.mxu0 %v1174_v13 }
  0x58   :  { %1049 = vmatpush3.bf16.msra.mxu0 %v1143_v15 }
  0x59   :  { %1050 = vmatprep.subr.bf16.mxu0 %v1174_v13 }
  0x5c   :  { %1051 = vmatpush3.bf16.msra.mxu0 %v1144_v16 }
  0x5d   :  { %1052 = vmatprep.subr.bf16.mxu0 %v1174_v13 }
  0x60   :  { %1053 = vmatpush3.bf16.msra.mxu0 %v1145_v17 }
  0x61   :  { %1054 = vmatprep.subr.bf16.mxu0 %v1174_v13 }
  0x64   :  { %1055 = vmatpush3.bf16.msra.mxu0 %v1146_v18 }
  0x65   :  { %1056 = vmatprep.subr.bf16.mxu0 %v1174_v13 }
  0x68   :  { %1057 = vmatpush3.bf16.msra.mxu0 %v1147_v19 }
  0x69   :  { %1058 = vmatprep.subr.bf16.mxu0 %v1174_v13 }
  0x6c   :  { %1059 = vmatpush3.bf16.msra.mxu0 %v1148_v20 }
  0xef   :  { %v963_v21 = vpop.f32.mrf.mxu0 }
  0xf0   :  { %v985_v22 = vpop.f32.mrf.mxu1 }
  0xf1   :  { %v964_v23 = vpop.f32.mrf.mxu0 }
  0xf2   :  { %v986_v24 = vpop.f32.mrf.mxu1  ;;  %v965_v29 = vadd.f32 %v964_v23, %v963_v21 }
  0xf3   :  { %v966_v25 = vpop.f32.mrf.mxu0  ;;  %v987_v32 = vadd.f32 %v986_v24, %v985_v22 }
  0xf4   :  { %v988_v26 = vpop.f32.mrf.mxu1  ;;  %v637_v31 = vadd.f32 %v965_v29, %v865_v30 }
  0xf5   :  { %v967_v27 = vpop.f32.mrf.mxu0 }
  0xf6   :  { %v989_v28 = vpop.f32.mrf.mxu1  ;;  %v677_v37 = vadd.f32 %v987_v32, %v637_v31 }
 0x10f   :  { %v1007_v33 = vpop.f32.mrf.mxu0 }
 0x110   :  { %v1029_v34 = vpop.f32.mrf.mxu1 }
 0x111   :  { %v1008_v35 = vpop.f32.mrf.mxu0 }
 0x112   :  { %v1030_v36 = vpop.f32.mrf.mxu1  ;;  %v1009_v38 = vadd.f32 %v1008_v35, %v1007_v33 }
 0x113   :  { %v1010_v39 = vpop.f32.mrf.mxu0  ;;  %v1031_v42 = vadd.f32 %v1030_v36, %v1029_v34 }
 0x114   :  { %v1032_v40 = vpop.f32.mrf.mxu1  ;;  %v717_v41 = vadd.f32 %v1009_v38, %v677_v37 }
 0x115   :  { %v1011_v43 = vpop.f32.mrf.mxu0 }
 0x116   :  { %v1033_v44 = vpop.f32.mrf.mxu1  ;;  %v757_v45 = vadd.f32 %v1031_v42, %v717_v41 }
 0x118   :  { %v762_v46 = vmax.f32 %v757_v45, 0.0 }
 0x11a   :  { %v763_v47 = vpack.c.bf16 %v762_v46, %v762_v46 }
 0x11c   :  { %1061 = vmatmul.mubr.bf16.vlgmr.msra.gmra.mxu0 %v763_v47 }
 0x1dc   :  { %v853_v49 = vpop.f32.mrf.mxu0 }
 0x1dd   :  { %v854_v50 = vadd.f32 %v938_v48, %v853_v49 }
 0x1de   :  { %v1062_v51 = vpop.f32.mrf.mxu0 }
 0x1df   :  { %859 = vst [vmem:[%s1259_s5] sm:$0xff] %v854_v50 }
 0x1e0   :  { %v856_v52 = vpop.f32.mrf.mxu0 }
 0x1e2   :  { %v1063_v53 = vpop.f32.mrf.mxu0 }
 0x1e3   :  { %864 = vsyncpa [#allocation3], 1 }

</bundles_post_ra>
